<compile_context>
chip_gen: v6e
topology: v6e:2x2x1
jax: 0.10.0
libtpu: 0.0.40
codegen_flags: <defaults>
</compile_context>

<pallas_src>
import jax
import jax.numpy as jnp
from jax.experimental import pallas as pl
from jax.experimental.pallas import tpu as pltpu

EPS = 1e-5
KPAD = 128   # lane-aligned offset of the `agg` half inside the augmented buffer

# Vector-slab row indices (each row is one [1, D] parameter vector, zero padded).
_R_G0G, _R_G0B, _R_G0A = 0, 1, 2
_R_B1, _R_G1G, _R_G1B, _R_G1A = 3, 4, 5, 6
_R_B2, _R_G2G, _R_G2B, _R_G2A = 7, 8, 9, 10
_R_B3, _R_BD, _R_BO = 11, 12, 13
_NUM_VEC_ROWS = 14


def _pack_params(params, F, H, C):
    """Pack the 22 small parameter arrays into two slabs.

    vec_slab : [14, VW]        all [1, D] gamma/beta/alpha/bias rows, zero padded.
    w_slab   : [3*256+2H, WW]  per-conv [W_root; W_rel] blocks padded to K=256 rows
               (W_root at rows [0,k), W_rel at rows [128,128+k), zeros elsewhere so
               unwritten lanes of the augmented buffer contract against zeros),
               followed by the dense and output weights.
    """
    (g0g, g0b, g0a, w1r, w1s, b1, g1g, g1b, g1a,
     w2r, w2s, b2, g2g, g2b, g2a, w3r, w3s, b3, wd, bd, wo, bo) = params

    VW = max(F, H, C)

    def row(v):
        v = jnp.asarray(v, jnp.float32).reshape(1, -1)
        return jnp.pad(v, ((0, 0), (0, VW - v.shape[1])))

    vec_slab = jnp.concatenate([
        row(g0g), row(g0b), row(g0a),
        row(b1), row(g1g), row(g1b), row(g1a),
        row(b2), row(g2g), row(g2b), row(g2a),
        row(b3), row(bd), row(bo)], axis=0)

    WW = max(H, C)

    def conv_block(w_root, w_rel):
        k = w_root.shape[0]
        blk = jnp.zeros((2 * KPAD, WW), jnp.float32)
        blk = blk.at[:k, :w_root.shape[1]].set(jnp.asarray(w_root, jnp.float32))
        blk = blk.at[KPAD:KPAD + k, :w_rel.shape[1]].set(jnp.asarray(w_rel, jnp.float32))
        return blk

    def wide(w):
        w = jnp.asarray(w, jnp.float32)
        return jnp.pad(w, ((0, 0), (0, WW - w.shape[1])))

    w_slab = jnp.concatenate([
        conv_block(w1s, w1r),   # conv1: root multiplies h, rel multiplies A@h
        conv_block(w2s, w2r),   # conv2
        conv_block(w3s, w3r),   # conv3
        wide(wd),               # dense
        wide(wo)], axis=0)      # output (lane-padded to WW)
    return vec_slab, w_slab


def _make_kernel(N, F, H, C, G, agg_dtype):
    # Static row offsets into the weight slab.
    o1 = 0
    o2 = 2 * KPAD
    o3 = 4 * KPAD
    od = 6 * KPAD
    oo = od + H

    def kernel(x_ref, adj_ref, pool_ref, vec_ref, w_ref, out_ref, aug_ref):
        vec = vec_ref[...]                               # [14, VW] -- tiny, lives in vregs
        # Hoisted cast: adjacency entries are small integer edge counts -> exact in bf16.
        adj = adj_ref[...].astype(agg_dtype)

        # Zero the augmented scratch once per grid step so unwritten lanes are 0
        # (they also multiply zero weight rows, but avoid uninitialized-NaN * 0).
        aug_ref[...] = jnp.zeros_like(aug_ref)

        def vrow(r, width):
            return vec[r:r + 1, :width]                  # [1, width]

        def graph_norm(h, rg, rb, ra, width):
            # GraphNorm, single graph: gamma * (h - alpha*mean) * rsqrt(var + eps) + beta
            mean = jnp.mean(h, axis=0, keepdims=True)
            hc = h - vrow(ra, width) * mean
            var = jnp.mean(hc * hc, axis=0, keepdims=True)
            scale = vrow(rg, width) * jax.lax.rsqrt(var + EPS)   # [1, width] on EUP
            return hc * scale + vrow(rb, width)

        def graph_conv(h, w_off, k, b_row):
            # Aggregation (dominant FLOPs): low-precision inputs, f32 MXU accumulation.
            agg = jnp.dot(adj, h.astype(agg_dtype),
                          preferred_element_type=jnp.float32)        # [N, k] f32
            # 128-aligned augmented buffer (no cross-lane shuffle):
            #   lanes [0, k)        <- h       (contracts against W_root rows)
            #   lanes [128, 128+k)  <- A@h     (contracts against W_rel rows)
            aug_ref[:, :k] = h
            aug_ref[:, KPAD:KPAD + k] = agg
            w = w_ref[w_off:w_off + 2 * KPAD, :H]                     # [256, H]
            return (jnp.dot(aug_ref[...], w, preferred_element_type=jnp.float32)
                    + vrow(b_row, H))

        h = x_ref[...]
        h = graph_norm(h, _R_G0G, _R_G0B, _R_G0A, F)
        h = jax.nn.relu(graph_conv(h, o1, F, _R_B1))
        h = graph_norm(h, _R_G1G, _R_G1B, _R_G1A, H)
        h = jax.nn.relu(graph_conv(h, o2, H, _R_B2))
        h = graph_norm(h, _R_G2G, _R_G2B, _R_G2A, H)
        h = jax.nn.relu(graph_conv(h, o3, H, _R_B3))

        # global_mean_pool: pool rows are pre-normalized by per-graph node counts.
        g = jnp.dot(pool_ref[...], h, preferred_element_type=jnp.float32)   # [G, H]

        # dropout(p=0.5, training=False) -> identity
        g = jax.nn.relu(
            jnp.dot(g, w_ref[od:od + H, :H], preferred_element_type=jnp.float32)
            + vrow(_R_BD, H))
        logits = (jnp.dot(g, w_ref[oo:oo + H, :C], preferred_element_type=jnp.float32)
                  + vrow(_R_BO, C))

        # softmax over classes (dim=1). Exact divide so rows sum to 1 to f32 precision
        # (the approximate EUP reciprocal only gave ~1e-3).
        logits = logits - jnp.max(logits, axis=-1, keepdims=True)
        e = jnp.exp(logits)
        out_ref[...] = e / jnp.sum(e, axis=-1, keepdims=True)

    return kernel


def gnn_forward(x, adj, pool, params, *, agg_dtype=jnp.bfloat16):
    """x: [B, N, F], adj: [B, N, N] (dense 'add' aggregation), pool: [B, G, N]."""
    B, N, F = x.shape
    H = params[3].shape[1]    # w1r: [F, H]
    C = params[-2].shape[1]   # wo:  [H, C]
    G = pool.shape[1]
    vec_slab, w_slab = _pack_params(params, F, H, C)
    VW = vec_slab.shape[1]
    WROWS, WW = w_slab.shape

    in_specs = [
        pl.BlockSpec((None, N, F), lambda b: (b, 0, 0)),          # x (per-batch block)
        pl.BlockSpec((None, N, N), lambda b: (b, 0, 0)),          # adj
        pl.BlockSpec((None, G, N), lambda b: (b, 0, 0)),          # pool
        pl.BlockSpec((_NUM_VEC_ROWS, VW), lambda b: (0, 0)),      # vec slab (shared)
        pl.BlockSpec((WROWS, WW), lambda b: (0, 0)),              # weight slab (shared)
    ]
    out_spec = pl.BlockSpec((None, G, C), lambda b: (b, 0, 0))

    # VMEM budget from the actual per-step footprint (double-buffered inputs + scratch),
    # with headroom, capped well below v7x's 64 MiB physical VMEM.
    itemsize = 4
    per_step = 2 * itemsize * (N * F + N * N + G * N
                               + _NUM_VEC_ROWS * VW + WROWS * WW + G * C)
    per_step += itemsize * N * 2 * KPAD
    vmem_limit = int(min(int(0.75 * 64 * 1024 * 1024),
                         max(8 * 1024 * 1024, 4 * per_step)))

    # Advisory cost estimate for XLA scheduling around the custom call.
    flops = 0
    for k in (F, H, H):
        flops += 2 * N * N * k            # A @ h
        flops += 2 * N * (2 * k) * H      # fused [h | A@h] @ [W_root; W_rel]
    flops += 2 * G * N * H + 2 * G * H * H + 2 * G * H * C
    flops *= B
    transcendentals = B * (F + 2 * H + G * C)   # rsqrt per norm lane + exp in softmax
    bytes_accessed = int((x.size + adj.size + pool.size
                          + vec_slab.size + w_slab.size + B * G * C) * itemsize)

    return pl.pallas_call(
        _make_kernel(N, F, H, C, G, agg_dtype),
        out_shape=jax.ShapeDtypeStruct((B, G, C), jnp.float32),
        grid_spec=pltpu.PrefetchScalarGridSpec(
            num_scalar_prefetch=0,
            grid=(B,),
            in_specs=in_specs,
            out_specs=out_spec,
            scratch_shapes=[pltpu.VMEM((N, 2 * KPAD), jnp.float32)]),
        compiler_params=pltpu.CompilerParams(
            dimension_semantics=("parallel",),        # v7x: share batches across both TCs
            vmem_limit_bytes=vmem_limit),
        cost_estimate=pl.CostEstimate(flops=int(flops),
                                      transcendentals=int(transcendentals),
                                      bytes_accessed=bytes_accessed),
    )(x, adj, pool, vec_slab, w_slab)


def gnn_reference(x, adj, pool, params):
    """Pure-JAX single-batch reference (f32 throughout)."""
    (g0g, g0b, g0a, w1r, w1s, b1, g1g, g1b, g1a,
     w2r, w2s, b2, g2g, g2b, g2a, w3r, w3s, b3, wd, bd, wo, bo) = params

    def norm(h, gamma, beta, alpha):
        mean = jnp.mean(h, axis=0, keepdims=True)
        hc = h - alpha * mean
        var = jnp.mean(hc * hc, axis=0, keepdims=True)
        return gamma * hc / jnp.sqrt(var + EPS) + beta

    def conv(h, w_rel, w_root, b):
        return (adj @ h) @ w_rel + b + h @ w_root

    h = norm(x, g0g, g0b, g0a)
    h = jax.nn.relu(conv(h, w1r, w1s, b1))
    h = norm(h, g1g, g1b, g1a)
    h = jax.nn.relu(conv(h, w2r, w2s, b2))
    h = norm(h, g2g, g2b, g2a)
    h = jax.nn.relu(conv(h, w3r, w3s, b3))
    g = pool @ h
    g = jax.nn.relu(g @ wd + bd)
    return jax.nn.softmax(g @ wo + bo, axis=1)


if __name__ == "__main__":
    # Small shapes consistent with the module's forward.
    B = 2            # graph batches stacked into one kernel call (one grid step each)
    N = 16           # total nodes per batch (2 graphs x 8 nodes)
    F = 8            # num_features
    H = 32           # hidden_channels
    C = 4            # num_classes
    G = 2            # graphs per batch

    key = jax.random.PRNGKey(0)
    keys = jax.random.split(key, 16)

    # Node features.
    x = jax.random.normal(keys[0], (B, N, F), dtype=jnp.float32)

    # Deterministic edges: bidirectional ring within each graph of 8 nodes; the
    # second batch additionally gets (i, i+2) chords so the batches differ.
    def make_adj(extra_chords):
        src, dst = [], []
        for g in range(G):
            base = g * 8
            for i in range(8):
                a, b = base + i, base + (i + 1) % 8
                src += [a, b]; dst += [b, a]
                if extra_chords:
                    a2, b2 = base + i, base + (i + 2) % 8
                    src += [a2, b2]; dst += [b2, a2]
        src = jnp.array(src, dtype=jnp.int32)
        dst = jnp.array(dst, dtype=jnp.int32)
        # Dense adjacency with "add" aggregation: A[i, j] = #edges j -> i.
        return jnp.zeros((N, N), dtype=jnp.float32).at[dst, src].add(1.0)

    adj = jnp.stack([make_adj(False), make_adj(True)], axis=0)

    # Batch assignment and mean-pooling matrix (same layout for every batch).
    batch = jnp.repeat(jnp.arange(G, dtype=jnp.int32), 8)
    onehot = (batch[None, :] == jnp.arange(G)[:, None]).astype(jnp.float32)
    pool1 = onehot / jnp.sum(onehot, axis=1, keepdims=True)
    pool = jnp.stack([pool1, pool1], axis=0)

    def lin(k, fan_in, fan_out, scale=0.2):
        return scale * jax.random.normal(k, (fan_in, fan_out), dtype=jnp.float32)

    def norm_params(k, dim):
        k1, k2, k3 = jax.random.split(k, 3)
        gamma = 1.0 + 0.1 * jax.random.normal(k1, (1, dim), dtype=jnp.float32)
        beta = 0.1 * jax.random.normal(k2, (1, dim), dtype=jnp.float32)
        alpha = 1.0 + 0.1 * jax.random.normal(k3, (1, dim), dtype=jnp.float32)
        return gamma, beta, alpha

    g0g, g0b, g0a = norm_params(keys[1], F)
    w1r = lin(keys[2], F, H); w1s = lin(keys[3], F, H)
    b1 = 0.1 * jax.random.normal(keys[4], (1, H), dtype=jnp.float32)
    g1g, g1b, g1a = norm_params(keys[5], H)
    w2r = lin(keys[6], H, H); w2s = lin(keys[7], H, H)
    b2 = 0.1 * jax.random.normal(keys[8], (1, H), dtype=jnp.float32)
    g2g, g2b, g2a = norm_params(keys[9], H)
    w3r = lin(keys[10], H, H); w3s = lin(keys[11], H, H)
    b3 = 0.1 * jax.random.normal(keys[12], (1, H), dtype=jnp.float32)
    wd = lin(keys[13], H, H)
    bd = 0.1 * jax.random.normal(keys[14], (1, H), dtype=jnp.float32)
    wo = lin(keys[15], H, C)
    bo = jnp.zeros((1, C), dtype=jnp.float32)

    params = [g0g, g0b, g0a, w1r, w1s, b1, g1g, g1b, g1a,
              w2r, w2s, b2, g2g, g2b, g2a, w3r, w3s, b3,
              wd, bd, wo, bo]

    ref = jax.vmap(lambda xb, ab, pb: gnn_reference(xb, ab, pb, params))(x, adj, pool)

    # 1) f32 aggregation path: exact-semantics validation.
    out_f32 = jax.block_until_ready(gnn_forward(x, adj, pool, params,
                                                agg_dtype=jnp.float32))
    assert out_f32.shape == (B, G, C)
    assert jnp.allclose(out_f32, ref, atol=1e-3, rtol=1e-3), (out_f32, ref)
    assert jnp.allclose(jnp.sum(out_f32, axis=-1), 1.0, atol=1e-4)

    # 2) bf16 aggregation path (perf default on v6e/v7x): adj counts are exact in
    #    bf16, h loses mantissa bits before A@h only; f32 accumulation. Looser check.
    out_bf16 = jax.block_until_ready(gnn_forward(x, adj, pool, params,
                                                 agg_dtype=jnp.bfloat16))
    assert out_bf16.shape == (B, G, C)
    assert jnp.allclose(out_bf16, ref, atol=3e-2, rtol=3e-2), (out_bf16, ref)
    assert jnp.allclose(jnp.sum(out_bf16, axis=-1), 1.0, atol=1e-4)

    print("KERNEL_OK")
</pallas_src>

<mosaic_0001>
module attributes {stable_mosaic.version = 11 : i64} {
  func.func @kernel(%arg0: i32, %arg1: memref<1x16x8xf32, #tpu.memory_space<vmem>>, %arg2: memref<1x16x16xf32, #tpu.memory_space<vmem>>, %arg3: memref<1x2x16xf32, #tpu.memory_space<vmem>>, %arg4: memref<14x32xf32, #tpu.memory_space<vmem>>, %arg5: memref<832x32xf32, #tpu.memory_space<vmem>>, %arg6: memref<1x2x4xf32, #tpu.memory_space<vmem>>, %arg7: memref<16x256xf32, #tpu.memory_space<vmem>>) attributes {dimension_semantics = [#tpu.dimension_semantics<parallel>], iteration_bounds = array<i64: 2>, scalar_prefetch = 0 : i64, scratch_operands = 1 : i64, tpu.core_type = #tpu.core_type<tc>, window_params = [{transform_indices = @transform_0, window_bounds = array<i64: 1, 16, 8>}, {transform_indices = @transform_1, window_bounds = array<i64: 1, 16, 16>}, {transform_indices = @transform_2, window_bounds = array<i64: 1, 2, 16>}, {pipeline_mode = #tpu.pipeline_mode<synchronous>, transform_indices = @transform_3, window_bounds = array<i64: 14, 32>}, {pipeline_mode = #tpu.pipeline_mode<synchronous>, transform_indices = @transform_4, window_bounds = array<i64: 832, 32>}, {transform_indices = @transform_5, window_bounds = array<i64: 1, 2, 4>}]} {
    %c0 = arith.constant 0 : index
    %c0_0 = arith.constant 0 : index
    %0 = vector.load %arg4[%c0, %c0_0] : memref<14x32xf32, #tpu.memory_space<vmem>>, vector<14x32xf32>
    %c0_1 = arith.constant 0 : index
    %c0_2 = arith.constant 0 : index
    %c0_3 = arith.constant 0 : index
    %1 = vector.load %arg2[%c0_1, %c0_2, %c0_3] : memref<1x16x16xf32, #tpu.memory_space<vmem>>, vector<1x16x16xf32>
    %2 = vector.shape_cast %1 : vector<1x16x16xf32> to vector<16x16xf32>
    %cst = arith.constant 0.000000e+00 : f32
    %3 = vector.broadcast %cst : f32 to vector<16x256xf32>
    %c0_4 = arith.constant 0 : index
    %c0_5 = arith.constant 0 : index
    %4 = vector.load %arg7[%c0_4, %c0_5] : memref<16x256xf32, #tpu.memory_space<vmem>>, vector<16x256xf32>
    tpu.vector_store %arg7[%c0_4, %c0_5], %3 {strides = array<i32>} : memref<16x256xf32, #tpu.memory_space<vmem>>, vector<16x256xf32>,
    %c0_6 = arith.constant 0 : index
    %c0_7 = arith.constant 0 : index
    %c0_8 = arith.constant 0 : index
    %5 = vector.load %arg1[%c0_6, %c0_7, %c0_8] : memref<1x16x8xf32, #tpu.memory_space<vmem>>, vector<1x16x8xf32>
    %6 = vector.shape_cast %5 : vector<1x16x8xf32> to vector<16x8xf32>
    %cst_9 = arith.constant dense<0.000000e+00> : vector<8xf32>
    %7 = vector.multi_reduction <add>, %6, %cst_9 [0] : vector<16x8xf32> to vector<8xf32>
    %8 = vector.shape_cast %7 : vector<8xf32> to vector<1x8xf32>
    %cst_10 = arith.constant 1.600000e+01 : f32
    %9 = vector.broadcast %cst_10 : f32 to vector<1x8xf32>
    %10 = arith.divf %8, %9 : vector<1x8xf32>
    %11 = vector.extract_strided_slice %0 {offsets = [2, 0], sizes = [1, 8], strides = [1, 1]} : vector<14x32xf32> to vector<1x8xf32>
    %12 = arith.mulf %11, %10 : vector<1x8xf32>
    %13 = vector.broadcast %12 : vector<1x8xf32> to vector<16x8xf32>
    %14 = arith.subf %6, %13 : vector<16x8xf32>
    %15 = arith.mulf %14, %14 : vector<16x8xf32>
    %cst_11 = arith.constant dense<0.000000e+00> : vector<8xf32>
    %16 = vector.multi_reduction <add>, %15, %cst_11 [0] : vector<16x8xf32> to vector<8xf32>
    %17 = vector.shape_cast %16 : vector<8xf32> to vector<1x8xf32>
    %cst_12 = arith.constant 1.600000e+01 : f32
    %18 = vector.broadcast %cst_12 : f32 to vector<1x8xf32>
    %19 = arith.divf %17, %18 : vector<1x8xf32>
    %20 = vector.extract_strided_slice %0 {offsets = [0, 0], sizes = [1, 8], strides = [1, 1]} : vector<14x32xf32> to vector<1x8xf32>
    %cst_13 = arith.constant 9.99999974E-6 : f32
    %21 = vector.broadcast %cst_13 : f32 to vector<1x8xf32>
    %22 = arith.addf %19, %21 : vector<1x8xf32>
    %23 = math.rsqrt %22 : vector<1x8xf32>
    %24 = arith.mulf %20, %23 : vector<1x8xf32>
    %25 = vector.broadcast %24 : vector<1x8xf32> to vector<16x8xf32>
    %26 = arith.mulf %14, %25 : vector<16x8xf32>
    %27 = vector.extract_strided_slice %0 {offsets = [1, 0], sizes = [1, 8], strides = [1, 1]} : vector<14x32xf32> to vector<1x8xf32>
    %28 = vector.broadcast %27 : vector<1x8xf32> to vector<16x8xf32>
    %29 = arith.addf %26, %28 : vector<16x8xf32>
    %cst_14 = arith.constant dense<0.000000e+00> : vector<16x8xf32>
    %30 = tpu.matmul %2, %29, %cst_14 {dimension_numbers = #tpu.dot_dimension_numbers<[1], [0], [0], [1], [0, 0, 1, 1], [], []>} : vector<16x16xf32>, vector<16x8xf32>, vector<16x8xf32> -> vector<16x8xf32>
    %c0_15 = arith.constant 0 : index
    %c0_16 = arith.constant 0 : index
    %31 = vector.load %arg7[%c0_15, %c0_16] : memref<16x256xf32, #tpu.memory_space<vmem>>, vector<16x8xf32>
    tpu.vector_store %arg7[%c0_15, %c0_16], %29 {strides = array<i32>} : memref<16x256xf32, #tpu.memory_space<vmem>>, vector<16x8xf32>,
    %c0_17 = arith.constant 0 : index
    %c128 = arith.constant 128 : index
    %32 = vector.load %arg7[%c0_17, %c128] : memref<16x256xf32, #tpu.memory_space<vmem>>, vector<16x8xf32>
    tpu.vector_store %arg7[%c0_17, %c128], %30 {strides = array<i32>} : memref<16x256xf32, #tpu.memory_space<vmem>>, vector<16x8xf32>,
    %c0_18 = arith.constant 0 : index
    %c0_19 = arith.constant 0 : index
    %33 = vector.load %arg5[%c0_18, %c0_19] : memref<832x32xf32, #tpu.memory_space<vmem>>, vector<256x32xf32>
    %c0_20 = arith.constant 0 : index
    %c0_21 = arith.constant 0 : index
    %34 = vector.load %arg7[%c0_20, %c0_21] : memref<16x256xf32, #tpu.memory_space<vmem>>, vector<16x256xf32>
    %cst_22 = arith.constant dense<0.000000e+00> : vector<16x32xf32>
    %35 = tpu.matmul %34, %33, %cst_22 {dimension_numbers = #tpu.dot_dimension_numbers<[1], [0], [0], [1], [0, 0, 1, 1], [], []>} : vector<16x256xf32>, vector<256x32xf32>, vector<16x32xf32> -> vector<16x32xf32>
    %36 = vector.extract_strided_slice %0 {offsets = [3, 0], sizes = [1, 32], strides = [1, 1]} : vector<14x32xf32> to vector<1x32xf32>
    %37 = vector.broadcast %36 : vector<1x32xf32> to vector<16x32xf32>
    %38 = arith.addf %35, %37 : vector<16x32xf32>
    %cst_23 = arith.constant 0.000000e+00 : f32
    %39 = vector.broadcast %cst_23 : f32 to vector<16x32xf32>
    %40 = arith.maximumf %38, %39 : vector<16x32xf32>
    %cst_24 = arith.constant dense<0.000000e+00> : vector<32xf32>
    %41 = vector.multi_reduction <add>, %40, %cst_24 [0] : vector<16x32xf32> to vector<32xf32>
    %42 = vector.shape_cast %41 : vector<32xf32> to vector<1x32xf32>
    %cst_25 = arith.constant 1.600000e+01 : f32
    %43 = vector.broadcast %cst_25 : f32 to vector<1x32xf32>
    %44 = arith.divf %42, %43 : vector<1x32xf32>
    %45 = vector.extract_strided_slice %0 {offsets = [6, 0], sizes = [1, 32], strides = [1, 1]} : vector<14x32xf32> to vector<1x32xf32>
    %46 = arith.mulf %45, %44 : vector<1x32xf32>
    %47 = vector.broadcast %46 : vector<1x32xf32> to vector<16x32xf32>
    %48 = arith.subf %40, %47 : vector<16x32xf32>
    %49 = arith.mulf %48, %48 : vector<16x32xf32>
    %cst_26 = arith.constant dense<0.000000e+00> : vector<32xf32>
    %50 = vector.multi_reduction <add>, %49, %cst_26 [0] : vector<16x32xf32> to vector<32xf32>
    %51 = vector.shape_cast %50 : vector<32xf32> to vector<1x32xf32>
    %cst_27 = arith.constant 1.600000e+01 : f32
    %52 = vector.broadcast %cst_27 : f32 to vector<1x32xf32>
    %53 = arith.divf %51, %52 : vector<1x32xf32>
    %54 = vector.extract_strided_slice %0 {offsets = [4, 0], sizes = [1, 32], strides = [1, 1]} : vector<14x32xf32> to vector<1x32xf32>
    %cst_28 = arith.constant 9.99999974E-6 : f32
    %55 = vector.broadcast %cst_28 : f32 to vector<1x32xf32>
    %56 = arith.addf %53, %55 : vector<1x32xf32>
    %57 = math.rsqrt %56 : vector<1x32xf32>
    %58 = arith.mulf %54, %57 : vector<1x32xf32>
    %59 = vector.broadcast %58 : vector<1x32xf32> to vector<16x32xf32>
    %60 = arith.mulf %48, %59 : vector<16x32xf32>
    %61 = vector.extract_strided_slice %0 {offsets = [5, 0], sizes = [1, 32], strides = [1, 1]} : vector<14x32xf32> to vector<1x32xf32>
    %62 = vector.broadcast %61 : vector<1x32xf32> to vector<16x32xf32>
    %63 = arith.addf %60, %62 : vector<16x32xf32>
    %cst_29 = arith.constant dense<0.000000e+00> : vector<16x32xf32>
    %64 = tpu.matmul %2, %63, %cst_29 {dimension_numbers = #tpu.dot_dimension_numbers<[1], [0], [0], [1], [0, 0, 1, 1], [], []>} : vector<16x16xf32>, vector<16x32xf32>, vector<16x32xf32> -> vector<16x32xf32>
    %c0_30 = arith.constant 0 : index
    %c0_31 = arith.constant 0 : index
    %65 = vector.load %arg7[%c0_30, %c0_31] : memref<16x256xf32, #tpu.memory_space<vmem>>, vector<16x32xf32>
    tpu.vector_store %arg7[%c0_30, %c0_31], %63 {strides = array<i32>} : memref<16x256xf32, #tpu.memory_space<vmem>>, vector<16x32xf32>,
    %c0_32 = arith.constant 0 : index
    %c128_33 = arith.constant 128 : index
    %66 = vector.load %arg7[%c0_32, %c128_33] : memref<16x256xf32, #tpu.memory_space<vmem>>, vector<16x32xf32>
    tpu.vector_store %arg7[%c0_32, %c128_33], %64 {strides = array<i32>} : memref<16x256xf32, #tpu.memory_space<vmem>>, vector<16x32xf32>,
    %c256 = arith.constant 256 : index
    %c0_34 = arith.constant 0 : index
    %67 = vector.load %arg5[%c256, %c0_34] : memref<832x32xf32, #tpu.memory_space<vmem>>, vector<256x32xf32>
    %c0_35 = arith.constant 0 : index
    %c0_36 = arith.constant 0 : index
    %68 = vector.load %arg7[%c0_35, %c0_36] : memref<16x256xf32, #tpu.memory_space<vmem>>, vector<16x256xf32>
    %cst_37 = arith.constant dense<0.000000e+00> : vector<16x32xf32>
    %69 = tpu.matmul %68, %67, %cst_37 {dimension_numbers = #tpu.dot_dimension_numbers<[1], [0], [0], [1], [0, 0, 1, 1], [], []>} : vector<16x256xf32>, vector<256x32xf32>, vector<16x32xf32> -> vector<16x32xf32>
    %70 = vector.extract_strided_slice %0 {offsets = [7, 0], sizes = [1, 32], strides = [1, 1]} : vector<14x32xf32> to vector<1x32xf32>
    %71 = vector.broadcast %70 : vector<1x32xf32> to vector<16x32xf32>
    %72 = arith.addf %69, %71 : vector<16x32xf32>
    %cst_38 = arith.constant 0.000000e+00 : f32
    %73 = vector.broadcast %cst_38 : f32 to vector<16x32xf32>
    %74 = arith.maximumf %72, %73 : vector<16x32xf32>
    %cst_39 = arith.constant dense<0.000000e+00> : vector<32xf32>
    %75 = vector.multi_reduction <add>, %74, %cst_39 [0] : vector<16x32xf32> to vector<32xf32>
    %76 = vector.shape_cast %75 : vector<32xf32> to vector<1x32xf32>
    %cst_40 = arith.constant 1.600000e+01 : f32
    %77 = vector.broadcast %cst_40 : f32 to vector<1x32xf32>
    %78 = arith.divf %76, %77 : vector<1x32xf32>
    %79 = vector.extract_strided_slice %0 {offsets = [10, 0], sizes = [1, 32], strides = [1, 1]} : vector<14x32xf32> to vector<1x32xf32>
    %80 = arith.mulf %79, %78 : vector<1x32xf32>
    %81 = vector.broadcast %80 : vector<1x32xf32> to vector<16x32xf32>
    %82 = arith.subf %74, %81 : vector<16x32xf32>
    %83 = arith.mulf %82, %82 : vector<16x32xf32>
    %cst_41 = arith.constant dense<0.000000e+00> : vector<32xf32>
    %84 = vector.multi_reduction <add>, %83, %cst_41 [0] : vector<16x32xf32> to vector<32xf32>
    %85 = vector.shape_cast %84 : vector<32xf32> to vector<1x32xf32>
    %cst_42 = arith.constant 1.600000e+01 : f32
    %86 = vector.broadcast %cst_42 : f32 to vector<1x32xf32>
    %87 = arith.divf %85, %86 : vector<1x32xf32>
    %88 = vector.extract_strided_slice %0 {offsets = [8, 0], sizes = [1, 32], strides = [1, 1]} : vector<14x32xf32> to vector<1x32xf32>
    %cst_43 = arith.constant 9.99999974E-6 : f32
    %89 = vector.broadcast %cst_43 : f32 to vector<1x32xf32>
    %90 = arith.addf %87, %89 : vector<1x32xf32>
    %91 = math.rsqrt %90 : vector<1x32xf32>
    %92 = arith.mulf %88, %91 : vector<1x32xf32>
    %93 = vector.broadcast %92 : vector<1x32xf32> to vector<16x32xf32>
    %94 = arith.mulf %82, %93 : vector<16x32xf32>
    %95 = vector.extract_strided_slice %0 {offsets = [9, 0], sizes = [1, 32], strides = [1, 1]} : vector<14x32xf32> to vector<1x32xf32>
    %96 = vector.broadcast %95 : vector<1x32xf32> to vector<16x32xf32>
    %97 = arith.addf %94, %96 : vector<16x32xf32>
    %cst_44 = arith.constant dense<0.000000e+00> : vector<16x32xf32>
    %98 = tpu.matmul %2, %97, %cst_44 {dimension_numbers = #tpu.dot_dimension_numbers<[1], [0], [0], [1], [0, 0, 1, 1], [], []>} : vector<16x16xf32>, vector<16x32xf32>, vector<16x32xf32> -> vector<16x32xf32>
    %c0_45 = arith.constant 0 : index
    %c0_46 = arith.constant 0 : index
    %99 = vector.load %arg7[%c0_45, %c0_46] : memref<16x256xf32, #tpu.memory_space<vmem>>, vector<16x32xf32>
    tpu.vector_store %arg7[%c0_45, %c0_46], %97 {strides = array<i32>} : memref<16x256xf32, #tpu.memory_space<vmem>>, vector<16x32xf32>,
    %c0_47 = arith.constant 0 : index
    %c128_48 = arith.constant 128 : index
    %100 = vector.load %arg7[%c0_47, %c128_48] : memref<16x256xf32, #tpu.memory_space<vmem>>, vector<16x32xf32>
    tpu.vector_store %arg7[%c0_47, %c128_48], %98 {strides = array<i32>} : memref<16x256xf32, #tpu.memory_space<vmem>>, vector<16x32xf32>,
    %c512 = arith.constant 512 : index
    %c0_49 = arith.constant 0 : index
    %101 = vector.load %arg5[%c512, %c0_49] : memref<832x32xf32, #tpu.memory_space<vmem>>, vector<256x32xf32>
    %c0_50 = arith.constant 0 : index
    %c0_51 = arith.constant 0 : index
    %102 = vector.load %arg7[%c0_50, %c0_51] : memref<16x256xf32, #tpu.memory_space<vmem>>, vector<16x256xf32>
    %cst_52 = arith.constant dense<0.000000e+00> : vector<16x32xf32>
    %103 = tpu.matmul %102, %101, %cst_52 {dimension_numbers = #tpu.dot_dimension_numbers<[1], [0], [0], [1], [0, 0, 1, 1], [], []>} : vector<16x256xf32>, vector<256x32xf32>, vector<16x32xf32> -> vector<16x32xf32>
    %104 = vector.extract_strided_slice %0 {offsets = [11, 0], sizes = [1, 32], strides = [1, 1]} : vector<14x32xf32> to vector<1x32xf32>
    %105 = vector.broadcast %104 : vector<1x32xf32> to vector<16x32xf32>
    %106 = arith.addf %103, %105 : vector<16x32xf32>
    %cst_53 = arith.constant 0.000000e+00 : f32
    %107 = vector.broadcast %cst_53 : f32 to vector<16x32xf32>
    %108 = arith.maximumf %106, %107 : vector<16x32xf32>
    %c0_54 = arith.constant 0 : index
    %c0_55 = arith.constant 0 : index
    %c0_56 = arith.constant 0 : index
    %109 = vector.load %arg3[%c0_54, %c0_55, %c0_56] : memref<1x2x16xf32, #tpu.memory_space<vmem>>, vector<1x2x16xf32>
    %110 = vector.shape_cast %109 : vector<1x2x16xf32> to vector<2x16xf32>
    %cst_57 = arith.constant dense<0.000000e+00> : vector<2x32xf32>
    %111 = tpu.matmul %110, %108, %cst_57 {dimension_numbers = #tpu.dot_dimension_numbers<[1], [0], [0], [1], [0, 0, 1, 1], [], []>} : vector<2x16xf32>, vector<16x32xf32>, vector<2x32xf32> -> vector<2x32xf32>
    %c768 = arith.constant 768 : index
    %c0_58 = arith.constant 0 : index
    %112 = vector.load %arg5[%c768, %c0_58] : memref<832x32xf32, #tpu.memory_space<vmem>>, vector<32x32xf32>
    %cst_59 = arith.constant dense<0.000000e+00> : vector<2x32xf32>
    %113 = tpu.matmul %111, %112, %cst_59 {dimension_numbers = #tpu.dot_dimension_numbers<[1], [0], [0], [1], [0, 0, 1, 1], [], []>} : vector<2x32xf32>, vector<32x32xf32>, vector<2x32xf32> -> vector<2x32xf32>
    %114 = vector.extract_strided_slice %0 {offsets = [12, 0], sizes = [1, 32], strides = [1, 1]} : vector<14x32xf32> to vector<1x32xf32>
    %115 = vector.broadcast %114 : vector<1x32xf32> to vector<2x32xf32>
    %116 = arith.addf %113, %115 : vector<2x32xf32>
    %cst_60 = arith.constant 0.000000e+00 : f32
    %117 = vector.broadcast %cst_60 : f32 to vector<2x32xf32>
    %118 = arith.maximumf %116, %117 : vector<2x32xf32>
    %c800 = arith.constant 800 : index
    %c0_61 = arith.constant 0 : index
    %119 = vector.load %arg5[%c800, %c0_61] : memref<832x32xf32, #tpu.memory_space<vmem>>, vector<32x4xf32>
    %cst_62 = arith.constant dense<0.000000e+00> : vector<2x4xf32>
    %120 = tpu.matmul %118, %119, %cst_62 {dimension_numbers = #tpu.dot_dimension_numbers<[1], [0], [0], [1], [0, 0, 1, 1], [], []>} : vector<2x32xf32>, vector<32x4xf32>, vector<2x4xf32> -> vector<2x4xf32>
    %121 = vector.extract_strided_slice %0 {offsets = [13, 0], sizes = [1, 4], strides = [1, 1]} : vector<14x32xf32> to vector<1x4xf32>
    %122 = vector.broadcast %121 : vector<1x4xf32> to vector<2x4xf32>
    %123 = arith.addf %120, %122 : vector<2x4xf32>
    %cst_63 = arith.constant dense<0xFF800000> : vector<2xf32>
    %124 = vector.multi_reduction <maximumf>, %123, %cst_63 [1] : vector<2x4xf32> to vector<2xf32>
    %125 = vector.shape_cast %124 : vector<2xf32> to vector<2x1xf32>
    %126 = vector.broadcast %125 : vector<2x1xf32> to vector<2x4xf32>
    %127 = arith.subf %123, %126 : vector<2x4xf32>
    %128 = math.exp %127 : vector<2x4xf32>
    %cst_64 = arith.constant dense<0.000000e+00> : vector<2xf32>
    %129 = vector.multi_reduction <add>, %128, %cst_64 [1] : vector<2x4xf32> to vector<2xf32>
    %130 = vector.shape_cast %129 : vector<2xf32> to vector<2x1xf32>
    %131 = vector.broadcast %130 : vector<2x1xf32> to vector<2x4xf32>
    %132 = arith.divf %128, %131 : vector<2x4xf32>
    %c0_65 = arith.constant 0 : index
    %c0_66 = arith.constant 0 : index
    %c0_67 = arith.constant 0 : index
    %133 = vector.load %arg6[%c0_65, %c0_66, %c0_67] : memref<1x2x4xf32, #tpu.memory_space<vmem>>, vector<1x2x4xf32>
    %134 = vector.shape_cast %133 : vector<1x2x4xf32> to vector<2x4xf32>
    %135 = vector.shape_cast %132 : vector<2x4xf32> to vector<1x2x4xf32>
    tpu.vector_store %arg6[%c0_65, %c0_66, %c0_67], %135 {strides = array<i32>} : memref<1x2x4xf32, #tpu.memory_space<vmem>>, vector<1x2x4xf32>,
    return
  }
  func.func @transform_0(%arg0: i32) -> (i32, i32, i32) {
    %c0_i32 = arith.constant 0 : i32
    %c0_i32_0 = arith.constant 0 : i32
    %c0_i32_1 = arith.constant 0 : i32
    return %arg0, %c0_i32, %c0_i32_0 : i32, i32, i32
  }
  func.func @transform_1(%arg0: i32) -> (i32, i32, i32) {
    %c0_i32 = arith.constant 0 : i32
    %c0_i32_0 = arith.constant 0 : i32
    %c0_i32_1 = arith.constant 0 : i32
    return %arg0, %c0_i32, %c0_i32_0 : i32, i32, i32
  }
  func.func @transform_2(%arg0: i32) -> (i32, i32, i32) {
    %c0_i32 = arith.constant 0 : i32
    %c0_i32_0 = arith.constant 0 : i32
    %c0_i32_1 = arith.constant 0 : i32
    return %arg0, %c0_i32, %c0_i32_0 : i32, i32, i32
  }
  func.func @transform_3(%arg0: i32) -> (i32, i32) {
    %c0_i32 = arith.constant 0 : i32
    %c0_i32_0 = arith.constant 0 : i32
    %c0_i32_1 = arith.constant 0 : i32
    return %c0_i32, %c0_i32_0 : i32, i32
  }
  func.func @transform_4(%arg0: i32) -> (i32, i32) {
    %c0_i32 = arith.constant 0 : i32
    %c0_i32_0 = arith.constant 0 : i32
    %c0_i32_1 = arith.constant 0 : i32
    return %c0_i32, %c0_i32_0 : i32, i32
  }
  func.func @transform_5(%arg0: i32) -> (i32, i32, i32) {
    %c0_i32 = arith.constant 0 : i32
    %c0_i32_0 = arith.constant 0 : i32
    %c0_i32_1 = arith.constant 0 : i32
    return %arg0, %c0_i32, %c0_i32_0 : i32, i32, i32
  }
}

</mosaic_0001>

<bundles_post_ra>
// kernel: tpu_custom_call.1
= control target key start
LH: loop header
LB: loop body
LE: loop exit
PB: predicated region body
PF: predicated region fallthrough
CT: control target
= control target key end

     0   :  { %10 = vsyncpa [#allocation4], 0  ;;  %s2244_s0 = inlined_call_operand.vmem [shape: f32[2,16,8], index: 0, kind: input, shape index: {}]   ;;  %s2245_s1 = inlined_call_operand.vmem [shape: f32[2,16,16], index: 1, kind: input, shape index: {}]   ;;  %s2246_s2 = inlined_call_operand.vmem [shape: f32[2,2,16], index: 2, kind: input, shape index: {}]   ;;  %s2247_s3 = inlined_call_operand.vmem [shape: f32[14,32], index: 3, kind: input, shape index: {}]   ;;  %s2248_s4 = inlined_call_operand.vmem [shape: f32[832,32], index: 4, kind: input, shape index: {}]   ;;  %s2249_s5 = inlined_call_operand.hbm [shape: f32[2,2,4], index: 5, kind: output, shape index: {}]  }
   0x1   :  { %12 = vsyncpa [#allocation4 + $0x1], 0  ;;  %s1707_s18 = smov 0   ;;  %s1709_s19 = smov 0  }
   0x2   :  { %s1711_s20 = smov 0   ;;  %s1713_s21 = smov 0  }
   0x3 LB: > { %s1728_s22 = sadd.s32 4294967295, %s1672_s21   ;;  %s1347_s23 = sadd.s32 4294967294, %s1672_s21   ;;  %s1672_s21 = sphi %s1713_s21, %s2255_s21   ;;  %s1668_s20 = sphi %s1711_s20, %s2254_s20   ;;  %s1664_s19 = sphi %s1709_s19, %s2253_s19   ;;  %s1660_s18 = sphi %s1707_s18, %s2252_s18  }
   0x4   : > { %s1732_s24 = sadd.s32 1, %s1672_s21   ;;  %s145_s25 = sadd.s32 1, %s1668_s20 }
   0x5   : > { %s142_s26 = ssub.s32 %s1672_s21, %s1732_s24  ;;  %p155_p0 = scmp.ne.s32.totalorder %s1668_s20, %s1664_s19 }
   0x6   : > { %p143_p1 = scmp.eq.s32.totalorder %s142_s26, 0  ;;  %p156_p2 = scmp.eq.s32.totalorder %s1728_s22, 1 }
   0x7   : > { %p161_p3 = scmp.ne.s32.totalorder %s1664_s19, %s1660_s18  ;;  %p162_p4 = scmp.eq.s32.totalorder %s1347_s23, 1 }
   0x8   : > { %s1743_s27 = scalar_select %p143_p1, %s1668_s20, %s145_s25  }
   0x9   : > { %p1745_p5 = por %p156_p2, %p155_p0  ;;  %p1749_p6 = por %p162_p4, %p161_p3 }
   0xa   : > { %p1350_p7 = scmp.ge.s32.totalorder %s1672_s21, 1  ;;  %p209_p8 = scmp.lt.s32.totalorder %s1672_s21, 3 }
   0xc   : > { %p210_p9 = pnand %p1350_p7, %p209_p8 }
   0xd   : > { %p246_p10 = scmp.lt.s32.totalorder (!%p210_p9), %s1728_s22, 1  ;;  %s243_s23 = sand.u32 (!%p210_p9), 1, %s1664_s19  }
   0xe   : > { %213 = sbr.rel (%p210_p9) target bundleno = 2374 (0x946), region = 40  ;;  %s1351_s25 = sshll.u32 (!%p210_p9), %s243_s23, 1 }
   0xf   : > { %s245_s26 = scalar_lea.vmem (!%p210_p9), [#allocation3], %s1351_s25  ;;  %s1251_s10 = scalar_lea.sflag (!%p210_p9), [#allocation4], %s243_s23 }
  0x13   : > { %v1674_v0 = vmov 0.0   ;;  %s1761_s30 = scalar_select %p246_p10, %s1728_s22, 1  ;;  %vm270_vm0 = vcmask 64512   ;;  %vm316_vm1 = vcmask 130048   ;;  %v283_v10 = vlaneseq  ;;  %v1784_v15 = vld [vmem:[%s2247_s3] sm:$0xff]  ;;  %v433_v46 = vld [vmem:[%s2248_s4 + $0xf8] sm:$0xff] }
  0x14   : > { %266 = vst [vmem:[#allocation2 + $0x10] sm:$0xff] %v1674_v0  ;;  %264 = vst [vmem:[#allocation2] sm:$0xff] %v1674_v0  ;;  %v417_v47 = vld [vmem:[%s2248_s4 + $0x78] sm:$0xff]  ;;  %v432_v48 = vld [vmem:[%s2248_s4 + $0xf0] sm:$0xff]  ;;  %vm519_vm2 = vcmask 261120   ;;  %vm1675_vm3 = vmmov 0  }
  0x15   : > { %265 = vst [vmem:[#allocation2 + $0x8] sm:$0xff] %v1674_v0  ;;  %267 = vst [vmem:[#allocation2 + $0x18] sm:$0xff] %v1674_v0  ;;  %s1370_s6 = sshll.u32 %s1761_s30, 4  ;;  %v1779_v13 = vshrl.u32 %v283_v10, 7  ;;  %v416_v49 = vld [vmem:[%s2248_s4 + $0x70] sm:$0xff]  ;;  %v431_v50 = vld [vmem:[%s2248_s4 + $0xe8] sm:$0xff] }
  0x16   : > { %s250_s9 = scalar_lea.vmem %s2244_s0, %s1370_s6  ;;  %s1770_s12 = scalar_lea.vmem %s2245_s1, %s1370_s6  ;;  %v415_v51 = vld [vmem:[%s2248_s4 + $0x68] sm:$0xff]  ;;  %v430_v52 = vld [vmem:[%s2248_s4 + $0xe0] sm:$0xff]  ;;  %v429_v54 = vld [vmem:[%s2248_s4 + $0xd8] sm:$0xff]  ;;  %vm1237_vm4 = vcmask 25600  }
  0x17   : > { %v268_v1 = vld [vmem:[%s250_s9] sm:$0xff]  ;;  %v269_v2 = vld [vmem:[%s250_s9 + $0x8] sm:$0xff]  ;;  %v285_v17 = vsub.s32 2, %v1779_v13  ;;  %v306_v35 = vsub.s32 0, %v1779_v13  ;;  %v312_v36 = vsub.s32 1, %v1779_v13  ;;  %v413_v55 = vld [vmem:[%s2248_s4 + $0x58] sm:$0xff] }
  0x18   : > { %v1773_v3 = vld [vmem:[%s1770_s12] sm:$0xff]  ;;  %v271_v4 = vsel %vm270_vm0, %v268_v1, 0.0  ;;  %v272_v5 = vsel %vm270_vm0, %v269_v2, 0.0  ;;  %v1803_v45 = vld [vmem:[%s1770_s12 + $0x8] sm:$0xff]  ;;  %v428_v56 = vld [vmem:[%s2248_s4 + $0xd0] sm:$0xff]  ;;  %s1356_s14 = sshll.u32 %s1761_s30, 1 }
  0x19   : > { %1515 = vmatprep.mubr.msk.f32.mxu1 %vm316_vm1, %v1773_v3  ;;  %v273_v6 = vadd.f32 %v272_v5, %v271_v4  ;;  %v313_v40 = vrot.slane %v1784_v15, %v312_v36  ;;  %v414_v53 = vld [vmem:[%s2248_s4 + $0x60] sm:$0xff]  ;;  %v412_v57 = vld [vmem:[%s2248_s4 + $0x50] sm:$0xff]  ;;  %v427_v58 = vld [vmem:[%s2248_s4 + $0xc8] sm:$0xff]  ;;  %s259_s17 = scalar_lea.vmem %s2246_s2, %s1356_s14  ;;  %s1367_s30 = sshll.u32 %s1728_s22, 5 }
  0x1a   : > { %v411_v59 = vld [vmem:[%s2248_s4 + $0x48] sm:$0xff]  ;;  %v426_v60 = vld [vmem:[%s2248_s4 + $0xc0] sm:$0xff]  ;;  %v425_v62 = vld [vmem:[%s2248_s4 + $0xb8] sm:$0xff]  ;;  %s1264_s6 = sshll.u32 %s245_s26, 4  ;;  %s1262_s9 = scalar_lea.hbm %s2249_s5, %s1367_s30  ;;  %s1265_s6 = int_to_ptr.vmem [resolvable:$true] %s1264_s6 }
  0x1b   : > { %v274_v7 = vrot.slane %v273_v6, 4  ;;  %v410_v61 = vld [vmem:[%s2248_s4 + $0x40] sm:$0xff]  ;;  %v409_v63 = vld [vmem:[%s2248_s4 + $0x38] sm:$0xff]  ;;  %v423_v4 = vld [vmem:[%s2248_s4 + $0xa8] sm:$0xff]  ;;  %s1612_s11 = scalar_lea.vmem %s1265_s6, 32  ;;  %s1676_s12 = smov [#allocation3]  }
  0x1c   : > { %v407_v5 = vld [vmem:[%s2248_s4 + $0x28] sm:$0xff]  ;;  %v420_v10 = vld [vmem:[%s2248_s4 + $0x90] sm:$0xff]  ;;  %p1613_p11 = scmp.ne.s32.totalorder %s1265_s6, %s1612_s11  ;;  %s1616_s13 = sshll.u32 %s1676_s12, 4  ;;  %s1617_s13 = int_to_ptr.vmem [resolvable:$false] %s1616_s13 }
  0x1d   : > { %v275_v8 = vadd.f32 %v274_v7, %v273_v6  ;;  %v422_v6 = vld [vmem:[%s2248_s4 + $0xa0] sm:$0xff]  ;;  %s1618_s22 = scalar_lea.vmem %s1617_s13, 64  ;;  %p1619_p0 = scmp.lt.s32.totalorder %s1265_s6, %s1617_s13 }
  0x1e   : > { %v406_v7 = vld [vmem:[%s2248_s4 + $0x20] sm:$0xff]  ;;  %p1614_p12 = pnand %p1613_p11, %p1745_p5  ;;  %p1620_p1 = scmp.lt.s32.totalorder %s1618_s22, %s1612_s11 }
  0x1f   : > { %v276_v9 = vrot.slane %v275_v8, 2 }
  0x20   : > { %p1615_p13 = pneg %p1614_p12  ;;  %p1621_p2 = por %p1620_p1, %p1619_p0 }
  0x21   : > { %v277_v11 = vadd.f32 %v276_v9, %v275_v8  ;;  %v421_v8 = vld [vmem:[%s2248_s4 + $0x98] sm:$0xff] }
  0x22   : > { %v405_v9 = vld [vmem:[%s2248_s4 + $0x18] sm:$0xff]  ;;  %p1622_p3 = pnand %p1621_p2, %p1615_p13 }
  0x23   : > { %v278_v12 = vrot.slane %v277_v11, 1 }
  0x25   : > { %v279_v14 = vadd.f32 %v278_v12, %v277_v11  ;;  %v404_v11 = vld [vmem:[%s2248_s4 + $0x10] sm:$0xff]  ;;  %v419_v12 = vld [vmem:[%s2248_s4 + $0x88] sm:$0xff] }
  0x27   : > { %v281_v16 = vmul.f32 0.0625, %v279_v14  ;;  %v403_v14 = vld [vmem:[%s2248_s4 + $0x8] sm:$0xff] }
  0x29   : > { %v282_v18 = vmul.f32 %v281_v16, %v1784_v15  ;;  %v418_v16 = vld [vmem:[%s2248_s4 + $0x80] sm:$0xff] }
  0x2b   : > { %v286_v19 = vrot.slane %v282_v18, %v285_v17  ;;  %v402_v18 = vld [vmem:[%s2248_s4] sm:$0xff] }
  0x2d   : > { %v287_v20 = vsub.f32 %v268_v1, %v286_v19  ;;  %v288_v21 = vsub.f32 %v269_v2, %v286_v19  ;;  %v424_v1 = vld [vmem:[%s2248_s4 + $0xb0] sm:$0xff] }
  0x2e   : > { %v408_v2 = vld [vmem:[%s2248_s4 + $0x30] sm:$0xff] }
  0x2f   : > { %v289_v22 = vmul.f32 %v287_v20, %v287_v20  ;;  %v290_v23 = vmul.f32 %v288_v21, %v288_v21 }
  0x31   : > { %v291_v24 = vsel %vm270_vm0, %v289_v22, 0.0  ;;  %v292_v25 = vsel %vm270_vm0, %v290_v23, 0.0 }
  0x32   : > { %v293_v26 = vadd.f32 %v292_v25, %v291_v24  ;;  %v674_v25 = vld [vmem:[%s2248_s4 + $0x1f8] sm:$0xff] }
  0x33   : > { %1418 = vmatprep.subr.mxu0 %v674_v25 }
  0x34   : > { %v294_v27 = vrot.slane %v293_v26, 4 }
  0x36   : > { %v295_v28 = vadd.f32 %v294_v27, %v293_v26  ;;  %v658_v26 = vld [vmem:[%s2248_s4 + $0x178] sm:$0xff]  ;;  %v673_v27 = vld [vmem:[%s2248_s4 + $0x1f0] sm:$0xff] }
  0x37   : > { %1419 = vmatpush3.msra.mxu0 %v658_v26 }
  0x38   : > { %v296_v29 = vrot.slane %v295_v28, 2  ;;  %1420 = vmatprep.subr.mxu0 %v673_v27 }
  0x3a   : > { %v297_v30 = vadd.f32 %v296_v29, %v295_v28  ;;  %v657_v28 = vld [vmem:[%s2248_s4 + $0x170] sm:$0xff]  ;;  %v672_v29 = vld [vmem:[%s2248_s4 + $0x1e8] sm:$0xff] }
  0x3b   : > { %1421 = vmatpush3.msra.mxu0 %v657_v28 }
  0x3c   : > { %v298_v31 = vrot.slane %v297_v30, 1  ;;  %1422 = vmatprep.subr.mxu0 %v672_v29  ;;  %v554_v29 = vsub.s32 4, %v1779_v13 }
  0x3e   : > { %v299_v32 = vadd.f32 %v298_v31, %v297_v30  ;;  %v656_v30 = vld [vmem:[%s2248_s4 + $0x168] sm:$0xff]  ;;  %v671_v31 = vld [vmem:[%s2248_s4 + $0x1e0] sm:$0xff] }
  0x3f   : > { %1423 = vmatpush3.msra.mxu0 %v656_v30  ;;  %v560_v30 = vsub.s32 5, %v1779_v13 }
  0x40   : > { %v300_v33 = vmul.f32 0.0625, %v299_v32  ;;  %v655_v32 = vld [vmem:[%s2248_s4 + $0x160] sm:$0xff]  ;;  %1424 = vmatprep.subr.mxu0 %v671_v31 }
  0x41   : > { %1425 = vmatpush3.msra.mxu0 %v655_v32 }
  0x42   : > { %v301_v34 = vadd.f32 1e-05, %v300_v33  ;;  %v670_v33 = vld [vmem:[%s2248_s4 + $0x1d8] sm:$0xff] }
  0x43   : > { %1426 = vmatprep.subr.mxu0 %v670_v33 }
  0x44   : > { %1602 = vrsqrt.f32 %v301_v34  ;;  %v654_v34 = vld [vmem:[%s2248_s4 + $0x158] sm:$0xff] }
  0x45   : > { %1427 = vmatpush3.msra.mxu0 %v654_v34  ;;  %v561_v34 = vrot.slane %v1784_v15, %v560_v30 }
  0x51   : > { %v1603_v37 = vpop.eup %1602 }
  0x52   : > { %v303_v38 = vmul.f32 %v1603_v37, %v1784_v15  ;;  %v669_v37 = vld [vmem:[%s2248_s4 + $0x1d0] sm:$0xff] }
  0x53   : > { %1428 = vmatprep.subr.mxu0 %v669_v37 }
  0x54   : > { %v307_v39 = vrot.slane %v303_v38, %v306_v35  ;;  %v653_v38 = vld [vmem:[%s2248_s4 + $0x150] sm:$0xff] }
  0x55   : > { %1429 = vmatpush3.msra.mxu0 %v653_v38 }
  0x56   : > { %v309_v41 = vmul.f32 %v307_v39, %v288_v21  ;;  %v308_v42 = vmul.f32 %v307_v39, %v287_v20  ;;  %v668_v39 = vld [vmem:[%s2248_s4 + $0x1c8] sm:$0xff] }
  0x57   : > { %1430 = vmatprep.subr.mxu0 %v668_v39 }
  0x58   : > { %v315_v43 = vadd.f32 %v313_v40, %v309_v41  ;;  %v314_v44 = vadd.f32 %v313_v40, %v308_v42  ;;  %v652_v40 = vld [vmem:[%s2248_s4 + $0x148] sm:$0xff]  ;;  %v667_v41 = vld [vmem:[%s2248_s4 + $0x1c0] sm:$0xff] }
  0x59   : > { %v651_v42 = vld [vmem:[%s2248_s4 + $0x140] sm:$0xff]  ;;  %1431 = vmatpush3.msra.mxu0 %v652_v40 }
  0x5a   : > { %1511 = vmatprep.subr.mxu1 %v315_v43  ;;  %399 = vst.msk [vmem:[#allocation2 + $0x10] sm:$0xff] %vm270_vm0, %v315_v43  ;;  %398 = vst.msk [vmem:[#allocation2] sm:$0xff] %vm270_vm0, %v314_v44  ;;  %1432 = vmatprep.subr.mxu0 %v667_v41  ;;  %v664_v41 = vld [vmem:[%s2248_s4 + $0x1a8] sm:$0xff] }
  0x5b   : > { %1512 = vmatpush3.msra.mxu1 %v315_v43  ;;  %v666_v43 = vld [vmem:[%s2248_s4 + $0x1b8] sm:$0xff]  ;;  %1433 = vmatpush3.msra.mxu0 %v651_v42  ;;  %v648_v42 = vld [vmem:[%s2248_s4 + $0x128] sm:$0xff] }
  0x5c   : > { %1513 = vmatprep.subr.mxu1 %v314_v44  ;;  %1434 = vmatprep.subr.mxu0 %v666_v43  ;;  %v663_v43 = vld [vmem:[%s2248_s4 + $0x1a0] sm:$0xff] }
  0x5d   : > { %1514 = vmatpush3.msra.mxu1 %v314_v44  ;;  %v650_v44 = vld [vmem:[%s2248_s4 + $0x138] sm:$0xff] }
  0x5e   : > { %1516 = vmatmul.mubr.msk.f32.vlgmr.msra.gmra.mxu1 %vm316_vm1, %v1803_v45  ;;  %1376 = vmatprep.subr.mxu1 %v433_v46  ;;  %v665_v46 = vld [vmem:[%s2248_s4 + $0x1b0] sm:$0xff] }
  0x5f   : > { %1377 = vmatpush3.msra.mxu1 %v417_v47  ;;  %v649_v47 = vld [vmem:[%s2248_s4 + $0x130] sm:$0xff]  ;;  %1435 = vmatpush3.msra.mxu0 %v650_v44  ;;  %v647_v44 = vld [vmem:[%s2248_s4 + $0x120] sm:$0xff] }
  0x60   : > { %1378 = vmatprep.subr.mxu1 %v432_v48  ;;  %1436 = vmatprep.subr.mxu0 %v665_v46  ;;  %v440_v48 = vsub.s32 3, %v1779_v13  ;;  %v646_v46 = vld [vmem:[%s2248_s4 + $0x118] sm:$0xff] }
  0x61   : > { %1379 = vmatpush3.msra.mxu1 %v416_v49  ;;  %v434_v21 = vld [vmem:[#allocation2] sm:$0xff]  ;;  %v436_v24 = vld [vmem:[#allocation2 + $0x10] sm:$0xff]  ;;  %1437 = vmatpush3.msra.mxu0 %v649_v47 }
  0x62   : > { %1380 = vmatprep.subr.mxu1 %v431_v50  ;;  %v441_v50 = vrot.slane %v1784_v15, %v440_v48  ;;  %1438 = vmatprep.subr.mxu0 %v664_v41  ;;  %v661_v47 = vld [vmem:[%s2248_s4 + $0x190] sm:$0xff] }
  0x63   : > { %1381 = vmatpush3.msra.mxu1 %v415_v51  ;;  %1439 = vmatpush3.msra.mxu0 %v648_v42 }
  0x64   : > { %1382 = vmatprep.subr.mxu1 %v430_v52  ;;  %1440 = vmatprep.subr.mxu0 %v663_v43 }
  0x65   : > { %1383 = vmatpush3.msra.mxu1 %v414_v53  ;;  %1441 = vmatpush3.msra.mxu0 %v647_v44 }
  0x66   : > { %1384 = vmatprep.subr.mxu1 %v429_v54 }
  0x67   : > { %1385 = vmatpush3.msra.mxu1 %v413_v55 }
  0x68   : > { %1386 = vmatprep.subr.mxu1 %v428_v56 }
  0x69   : > { %1387 = vmatpush3.msra.mxu1 %v412_v57 }
  0x6a   : > { %1388 = vmatprep.subr.mxu1 %v427_v58 }
  0x6b   : > { %1389 = vmatpush3.msra.mxu1 %v411_v59 }
  0x6c   : > { %1390 = vmatprep.subr.mxu1 %v426_v60 }
  0x6d   : > { %1391 = vmatpush3.msra.mxu1 %v410_v61 }
  0x6e   : > { %1392 = vmatprep.subr.mxu1 %v425_v62 }
  0x6f   : > { %1393 = vmatpush3.msra.mxu1 %v409_v63 }
  0x70   : > { %1394 = vmatprep.subr.mxu1 %v424_v1 }
  0x71   : > { %1395 = vmatpush3.msra.mxu1 %v408_v2 }
  0x72   : > { %1396 = vmatprep.subr.mxu1 %v423_v4 }
  0x73   : > { %1397 = vmatpush3.msra.mxu1 %v407_v5 }
  0x74   : > { %1398 = vmatprep.subr.mxu1 %v422_v6 }
  0x75   : > { %1399 = vmatpush3.msra.mxu1 %v406_v7 }
  0x76   : > { %1400 = vmatprep.subr.mxu1 %v421_v8  ;;  %v533_v8 = vsub.s32 6, %v1779_v13 }
  0x77   : > { %1401 = vmatpush3.msra.mxu1 %v405_v9 }
  0x78   : > { %1402 = vmatprep.subr.mxu1 %v420_v10 }
  0x79   : > { %1403 = vmatpush3.msra.mxu1 %v404_v11 }
  0x7a   : > { %1404 = vmatprep.subr.mxu1 %v419_v12 }
  0x7b   : > { %1405 = vmatpush3.msra.mxu1 %v403_v14 }
  0x7c   : > { %1406 = vmatprep.subr.mxu1 %v418_v16 }
  0x7d   : > { %1407 = vmatpush3.msra.mxu1 %v402_v18 }
 0x11e   : > { %v1517_v19 = vpop.f32.mrf.mxu1 }
 0x11f   : > { %401 = vst.msk [vmem:[#allocation2 + $0x18] sm:$0xff] %vm270_vm0, %v1517_v19 }
 0x120   : > { %v389_v20 = vpop.f32.mrf.mxu1 }
 0x121   : > { %400 = vst.msk [vmem:[#allocation2 + $0x8] sm:$0xff] %vm270_vm0, %v389_v20 }
 0x126   : > { %v437_v23 = vld [vmem:[#allocation2 + $0x18] sm:$0xff] }
 0x128   : > { %v435_v22 = vld [vmem:[#allocation2 + $0x8] sm:$0xff] }
 0x129   : > { %506 = vmatprep.mubr.f32.mxu1 %v435_v22 }
 0x12a   : > { %507 = vmatmul.mubr.f32.vlgmr.msra.gmra.mxu1 %v434_v21 }
 0x12b   : > { %511 = vmatprep.mubr.f32.mxu1 %v437_v23 }
 0x12e   : > { %512 = vmatmul.mubr.f32.gmra.mxu1 %v436_v24 }
 0x12f   : > { %1522 = vmatprep.mubr.msk.f32.mxu1 %vm316_vm1, %v1773_v3 }
 0x1ea   : > { %v1408_v49 = vpop.f32.mrf.mxu1 }
 0x1ec   : > { %v1409_v51 = vpop.f32.mrf.mxu1 }
 0x1ed   : > { %v1410_v52 = vadd.f32 %v1409_v51, %v1408_v49  ;;  %v645_v49 = vld [vmem:[%s2248_s4 + $0x110] sm:$0xff]  ;;  %v644_v51 = vld [vmem:[%s2248_s4 + $0x108] sm:$0xff] }
 0x1ee   : > { %v1411_v53 = vpop.f32.mrf.mxu1 }
 0x1ef   : > { %v509_v54 = vadd.f32 %v1410_v52, %v441_v50  ;;  %v659_v52 = vld [vmem:[%s2248_s4 + $0x180] sm:$0xff] }
 0x1f0   : > { %v1412_v55 = vpop.f32.mrf.mxu1 }
 0x1f1   : > { %v1413_v56 = vadd.f32 %v1412_v55, %v1411_v53  ;;  %v517_v57 = vmax.f32 %v509_v54, 0.0  ;;  %v643_v53 = vld [vmem:[%s2248_s4 + $0x100] sm:$0xff] }
 0x1f3   : > { %v514_v58 = vadd.f32 %v1413_v56, %v441_v50  ;;  %v520_v60 = vsel %vm519_vm2, %v517_v57, 0.0  ;;  %v660_v50 = vld [vmem:[%s2248_s4 + $0x188] sm:$0xff] }
 0x1f5   : > { %v518_v59 = vmax.f32 %v514_v58, 0.0 }
 0x1f7   : > { %v521_v61 = vsel %vm519_vm2, %v518_v59, 0.0 }
 0x1f8   : > { %v522_v62 = vadd.f32 %v521_v61, %v520_v60  ;;  %v914_v60 = vld [vmem:[%s2248_s4 + $0x2f8] sm:$0xff] }
 0x1f9   : > { %v898_v61 = vld [vmem:[%s2248_s4 + $0x278] sm:$0xff] }
 0x1fa   : > { %v523_v63 = vrot.slane %v522_v62, 4 }
 0x1fc   : > { %v524_v1 = vadd.f32 %v523_v63, %v522_v62  ;;  %v913_v62 = vld [vmem:[%s2248_s4 + $0x2f0] sm:$0xff] }
 0x1fd   : > { %v897_v63 = vld [vmem:[%s2248_s4 + $0x270] sm:$0xff] }
 0x1fe   : > { %v525_v2 = vrot.slane %v524_v1, 2 }
 0x200   : > { %v526_v4 = vadd.f32 %v525_v2, %v524_v1  ;;  %v912_v1 = vld [vmem:[%s2248_s4 + $0x2e8] sm:$0xff] }
 0x201   : > { %v896_v2 = vld [vmem:[%s2248_s4 + $0x268] sm:$0xff] }
 0x202   : > { %v527_v5 = vrot.slane %v526_v4, 1 }
 0x204   : > { %v528_v6 = vadd.f32 %v527_v5, %v526_v4  ;;  %v911_v4 = vld [vmem:[%s2248_s4 + $0x2e0] sm:$0xff] }
 0x205   : > { %v895_v5 = vld [vmem:[%s2248_s4 + $0x260] sm:$0xff] }
 0x206   : > { %v529_v7 = vmul.f32 0.0625, %v528_v6  ;;  %v910_v6 = vld [vmem:[%s2248_s4 + $0x2d8] sm:$0xff] }
 0x208   : > { %v530_v9 = vmul.f32 %v529_v7, %v1784_v15  ;;  %v894_v7 = vld [vmem:[%s2248_s4 + $0x258] sm:$0xff] }
 0x20a   : > { %v534_v10 = vrot.slane %v530_v9, %v533_v8  ;;  %v909_v8 = vld [vmem:[%s2248_s4 + $0x2d0] sm:$0xff] }
 0x20b   : > { %v893_v9 = vld [vmem:[%s2248_s4 + $0x250] sm:$0xff] }
 0x20c   : > { %v535_v11 = vsub.f32 %v517_v57, %v534_v10  ;;  %v536_v12 = vsub.f32 %v518_v59, %v534_v10  ;;  %v908_v10 = vld [vmem:[%s2248_s4 + $0x2c8] sm:$0xff] }
 0x20e   : > { %v537_v14 = vmul.f32 %v535_v11, %v535_v11  ;;  %v538_v16 = vmul.f32 %v536_v12, %v536_v12 }
 0x210   : > { %v539_v18 = vsel %vm519_vm2, %v537_v14, 0.0  ;;  %v540_v19 = vsel %vm519_vm2, %v538_v16, 0.0  ;;  %v891_v14 = vld [vmem:[%s2248_s4 + $0x240] sm:$0xff]  ;;  %v906_v16 = vld [vmem:[%s2248_s4 + $0x2b8] sm:$0xff] }
 0x211   : > { %v541_v20 = vadd.f32 %v540_v19, %v539_v18  ;;  %v890_v18 = vld [vmem:[%s2248_s4 + $0x238] sm:$0xff]  ;;  %v905_v19 = vld [vmem:[%s2248_s4 + $0x2b0] sm:$0xff] }
 0x213   : > { %v542_v21 = vrot.slane %v541_v20, 4 }
 0x215   : > { %v543_v22 = vadd.f32 %v542_v21, %v541_v20  ;;  %v889_v20 = vld [vmem:[%s2248_s4 + $0x230] sm:$0xff]  ;;  %v681_v21 = vsub.s32 7, %v1779_v13 }
 0x217   : > { %v544_v23 = vrot.slane %v543_v22, 2 }
 0x219   : > { %v545_v24 = vadd.f32 %v544_v23, %v543_v22  ;;  %v682_v23 = vrot.slane %v1784_v15, %v681_v21  ;;  %v883_v21 = vld [vmem:[%s2248_s4 + $0x200] sm:$0xff] }
 0x21b   : > { %v546_v25 = vrot.slane %v545_v24, 1 }
 0x21d   : > { %v547_v26 = vadd.f32 %v546_v25, %v545_v24 }
 0x21f   : > { %v548_v27 = vmul.f32 0.0625, %v547_v26 }
 0x221   : > { %v549_v28 = vadd.f32 1e-05, %v548_v27 }
 0x223   : > { %1604 = vrsqrt.f32 %v549_v28 }
 0x230   : > { %v1605_v31 = vpop.eup %1604 }
 0x231   : > { %v551_v32 = vmul.f32 %v1605_v31, %v1784_v15 }
 0x233   : > { %v555_v33 = vrot.slane %v551_v32, %v554_v29 }
 0x235   : > { %v557_v37 = vmul.f32 %v555_v33, %v536_v12  ;;  %v556_v38 = vmul.f32 %v555_v33, %v535_v11  ;;  %v892_v11 = vld [vmem:[%s2248_s4 + $0x248] sm:$0xff]  ;;  %v907_v12 = vld [vmem:[%s2248_s4 + $0x2c0] sm:$0xff] }
 0x237   : > { %v563_v39 = vadd.f32 %v561_v34, %v557_v37  ;;  %v562_v40 = vadd.f32 %v561_v34, %v556_v38 }
 0x239   : > { %1518 = vmatprep.subr.mxu1 %v563_v39  ;;  %640 = vst.msk [vmem:[#allocation2 + $0x10] sm:$0xff] %vm519_vm2, %v563_v39  ;;  %639 = vst.msk [vmem:[#allocation2] sm:$0xff] %vm519_vm2, %v562_v40 }
 0x23a   : > { %1519 = vmatpush3.msra.mxu1 %v563_v39 }
 0x23b   : > { %1520 = vmatprep.subr.mxu1 %v562_v40 }
 0x23c   : > { %1521 = vmatpush3.msra.mxu1 %v562_v40 }
 0x23d   : > { %1523 = vmatmul.mubr.msk.f32.vlgmr.msra.gmra.mxu1 %vm316_vm1, %v1803_v45 }
 0x23e   : > { %1529 = vmatprep.mubr.msk.f32.mxu1 %vm316_vm1, %v1773_v3  ;;  %v662_v3 = vld [vmem:[%s2248_s4 + $0x198] sm:$0xff] }
 0x23f   : > { %1442 = vmatprep.subr.mxu0 %v662_v3  ;;  %v2096_v3 = vld [vmem:[%s2247_s3 + $0x8] sm:$0x3f] }
 0x240   : > { %1443 = vmatpush3.msra.mxu0 %v646_v46  ;;  %v675_v57 = vld [vmem:[#allocation2] sm:$0xff]  ;;  %v677_v59 = vld [vmem:[#allocation2 + $0x10] sm:$0xff] }
 0x241   : > { %1444 = vmatprep.subr.mxu0 %v661_v47 }
 0x242   : > { %1445 = vmatpush3.msra.mxu0 %v645_v49 }
 0x243   : > { %1446 = vmatprep.subr.mxu0 %v660_v50 }
 0x244   : > { %1447 = vmatpush3.msra.mxu0 %v644_v51 }
 0x245   : > { %1448 = vmatprep.subr.mxu0 %v659_v52 }
 0x246   : > { %1449 = vmatpush3.msra.mxu0 %v643_v53 }
 0x247   : > { %1460 = vmatprep.subr.mxu0 %v914_v60 }
 0x2fd   : > { %v1524_v54 = vpop.f32.mrf.mxu1 }
 0x2fe   : > { %642 = vst.msk [vmem:[#allocation2 + $0x18] sm:$0xff] %vm519_vm2, %v1524_v54 }
 0x2ff   : > { %v630_v55 = vpop.f32.mrf.mxu1 }
 0x300   : > { %641 = vst.msk [vmem:[#allocation2 + $0x8] sm:$0xff] %vm519_vm2, %v630_v55 }
 0x305   : > { %v678_v58 = vld [vmem:[#allocation2 + $0x18] sm:$0xff] }
 0x307   : > { %v676_v56 = vld [vmem:[#allocation2 + $0x8] sm:$0xff] }
 0x308   : > { %747 = vmatprep.mubr.f32.mxu0 %v676_v56 }
 0x309   : > { %748 = vmatmul.mubr.f32.vlgmr.msra.gmra.mxu0 %v675_v57 }
 0x30a   : > { %752 = vmatprep.mubr.f32.mxu0 %v678_v58  ;;  %1461 = vmatpush3.msra.mxu0 %v898_v61 }
 0x30b   : > { %1462 = vmatprep.subr.mxu0 %v913_v62 }
 0x30c   : > { %1463 = vmatpush3.msra.mxu0 %v897_v63 }
 0x30d   : > { %753 = vmatmul.mubr.f32.gmra.mxu0 %v677_v59  ;;  %1464 = vmatprep.subr.mxu0 %v912_v1 }
 0x30e   : > { %1465 = vmatpush3.msra.mxu0 %v896_v2 }
 0x30f   : > { %1466 = vmatprep.subr.mxu0 %v911_v4 }
 0x310   : > { %1467 = vmatpush3.msra.mxu0 %v895_v5  ;;  %v801_v5 = vrot.slane %v2096_v3, %v312_v36  ;;  %v888_v36 = vld [vmem:[%s2248_s4 + $0x228] sm:$0xff] }
 0x311   : > { %1468 = vmatprep.subr.mxu0 %v910_v6 }
 0x312   : > { %1469 = vmatpush3.msra.mxu0 %v894_v7 }
 0x313   : > { %1470 = vmatprep.subr.mxu0 %v909_v8 }
 0x314   : > { %1471 = vmatpush3.msra.mxu0 %v893_v9 }
 0x315   : > { %1472 = vmatprep.subr.mxu0 %v908_v10  ;;  %v903_v10 = vld [vmem:[%s2248_s4 + $0x2a0] sm:$0xff] }
 0x316   : > { %1473 = vmatpush3.msra.mxu0 %v892_v11  ;;  %v902_v11 = vld [vmem:[%s2248_s4 + $0x298] sm:$0xff] }
 0x317   : > { %1474 = vmatprep.subr.mxu0 %v907_v12  ;;  %v886_v12 = vld [vmem:[%s2248_s4 + $0x218] sm:$0xff] }
 0x318   : > { %1475 = vmatpush3.msra.mxu0 %v891_v14  ;;  %v901_v14 = vld [vmem:[%s2248_s4 + $0x290] sm:$0xff] }
 0x319   : > { %1476 = vmatprep.subr.mxu0 %v906_v16  ;;  %v885_v16 = vld [vmem:[%s2248_s4 + $0x210] sm:$0xff] }
 0x31a   : > { %1477 = vmatpush3.msra.mxu0 %v890_v18  ;;  %v900_v18 = vld [vmem:[%s2248_s4 + $0x288] sm:$0xff] }
 0x31b   : > { %1478 = vmatprep.subr.mxu0 %v905_v19  ;;  %v884_v19 = vld [vmem:[%s2248_s4 + $0x208] sm:$0xff] }
 0x31c   : > { %1479 = vmatpush3.msra.mxu0 %v889_v20  ;;  %v899_v20 = vld [vmem:[%s2248_s4 + $0x280] sm:$0xff] }
 0x3c9   : > { %v1450_v22 = vpop.f32.mrf.mxu0 }
 0x3cb   : > { %v1451_v24 = vpop.f32.mrf.mxu0 }
 0x3cc   : > { %v1452_v25 = vadd.f32 %v1451_v24, %v1450_v22 }
 0x3cd   : > { %v1453_v26 = vpop.f32.mrf.mxu0 }
 0x3ce   : > { %v750_v27 = vadd.f32 %v1452_v25, %v682_v23 }
 0x3cf   : > { %v1454_v28 = vpop.f32.mrf.mxu0 }
 0x3d0   : > { %v1455_v31 = vadd.f32 %v1454_v28, %v1453_v26  ;;  %v758_v32 = vmax.f32 %v750_v27, 0.0 }
 0x3d2   : > { %v755_v33 = vadd.f32 %v1455_v31, %v682_v23  ;;  %v760_v37 = vsel %vm519_vm2, %v758_v32, 0.0 }
 0x3d4   : > { %v759_v34 = vmax.f32 %v755_v33, 0.0  ;;  %v922_v33 = vrot.slane %v2096_v3, %v440_v48  ;;  %v1077_v48 = vld [vmem:[%s2248_s4 + $0x318] sm:$0xff] }
 0x3d6   : > { %v761_v38 = vsel %vm519_vm2, %v759_v34, 0.0 }
 0x3d7   : > { %v762_v39 = vadd.f32 %v761_v38, %v760_v37 }
 0x3d9   : > { %v763_v40 = vrot.slane %v762_v39, 4 }
 0x3db   : > { %v764_v41 = vadd.f32 %v763_v40, %v762_v39 }
 0x3dd   : > { %v765_v42 = vrot.slane %v764_v41, 2 }
 0x3df   : > { %v766_v43 = vadd.f32 %v765_v42, %v764_v41 }
 0x3e1   : > { %v767_v44 = vrot.slane %v766_v43, 1 }
 0x3e3   : > { %v768_v15 = vadd.f32 %v767_v44, %v766_v43  ;;  %v1000_v43 = vld [vmem:[%s259_s17] sm:$0x3]  ;;  %v1076_v44 = vld [vmem:[%s2248_s4 + $0x310] sm:$0xff] }
 0x3e5   : > { %v769_v46 = vmul.f32 0.0625, %v768_v15  ;;  %v1075_v15 = vld [vmem:[%s2248_s4 + $0x308] sm:$0xff] }
 0x3e7   : > { %v770_v47 = vmul.f32 %v769_v46, %v2096_v3  ;;  %v1074_v46 = vld [vmem:[%s2248_s4 + $0x300] sm:$0xff] }
 0x3e9   : > { %v774_v49 = vrot.slane %v770_v47, %v285_v17  ;;  %v1159_v47 = vld [vmem:[%s2248_s4 + $0x338] sm:$0xff] }
 0x3eb   : > { %v775_v50 = vsub.f32 %v758_v32, %v774_v49  ;;  %v776_v51 = vsub.f32 %v759_v34, %v774_v49 }
 0x3ed   : > { %v777_v52 = vmul.f32 %v775_v50, %v775_v50  ;;  %v778_v53 = vmul.f32 %v776_v51, %v776_v51 }
 0x3ef   : > { %v779_v54 = vsel %vm519_vm2, %v777_v52, 0.0  ;;  %v780_v55 = vsel %vm519_vm2, %v778_v53, 0.0  ;;  %v1157_v52 = vld [vmem:[%s2248_s4 + $0x328] sm:$0xff]  ;;  %v1156_v53 = vld [vmem:[%s2248_s4 + $0x320] sm:$0xff] }
 0x3f0   : > { %v781_v56 = vadd.f32 %v780_v55, %v779_v54  ;;  %v1081_v54 = vrot.slane %v2096_v3, %v554_v29 }
 0x3f2   : > { %v782_v57 = vrot.slane %v781_v56, 4 }
 0x3f4   : > { %v783_v58 = vadd.f32 %v782_v57, %v781_v56 }
 0x3f6   : > { %v784_v59 = vrot.slane %v783_v58, 2 }
 0x3f8   : > { %v785_v60 = vadd.f32 %v784_v59, %v783_v58  ;;  %v1163_v59 = vrot.slane %v2096_v3, %v560_v30 }
 0x3fa   : > { %v786_v61 = vrot.slane %v785_v60, 1 }
 0x3fc   : > { %v787_v62 = vadd.f32 %v786_v61, %v785_v60 }
 0x3fe   : > { %v788_v63 = vmul.f32 0.0625, %v787_v62 }
 0x400   : > { %v789_v1 = vadd.f32 1e-05, %v788_v63 }
 0x402   : > { %1606 = vrsqrt.f32 %v789_v1 }
 0x40f   : > { %v1607_v2 = vpop.eup %1606 }
 0x410   : > { %v791_v17 = vmul.f32 %v1607_v2, %v2096_v3 }
 0x412   : > { %v795_v4 = vrot.slane %v791_v17, %v306_v35  ;;  %v904_v35 = vld [vmem:[%s2248_s4 + $0x2a8] sm:$0xff] }
 0x413   : > { %1480 = vmatprep.subr.mxu0 %v904_v35 }
 0x414   : > { %v797_v6 = vmul.f32 %v795_v4, %v776_v51  ;;  %v796_v7 = vmul.f32 %v795_v4, %v775_v50  ;;  %1481 = vmatpush3.msra.mxu0 %v888_v36  ;;  %v1158_v51 = vld [vmem:[%s2248_s4 + $0x330] sm:$0xff] }
 0x415   : > { %1482 = vmatprep.subr.mxu0 %v903_v10 }
 0x416   : > { %v803_v8 = vadd.f32 %v801_v5, %v797_v6  ;;  %v802_v9 = vadd.f32 %v801_v5, %v796_v7 }
 0x418   : > { %1525 = vmatprep.subr.mxu1 %v803_v8  ;;  %880 = vst.msk [vmem:[#allocation2 + $0x10] sm:$0xff] %vm519_vm2, %v803_v8  ;;  %879 = vst.msk [vmem:[#allocation2] sm:$0xff] %vm519_vm2, %v802_v9 }
 0x419   : > { %1526 = vmatpush3.msra.mxu1 %v803_v8 }
 0x41a   : > { %1527 = vmatprep.subr.mxu1 %v802_v9 }
 0x41b   : > { %1528 = vmatpush3.msra.mxu1 %v802_v9 }
 0x41c   : > { %1530 = vmatmul.mubr.msk.f32.vlgmr.msra.gmra.mxu1 %vm316_vm1, %v1803_v45  ;;  %1532 = vmatprep.subr.mxu1 %v1674_v0  ;;  %v887_v45 = vld [vmem:[%s2248_s4 + $0x220] sm:$0xff] }
 0x41d   : > { %1483 = vmatpush3.msra.mxu0 %v887_v45  ;;  %1536 = vmatprep.mubr.msk.f32.mxu1 %vm1675_vm3, %v1674_v0 }
 0x41e   : > { %1484 = vmatprep.subr.mxu0 %v902_v11 }
 0x41f   : > { %1485 = vmatpush3.msra.mxu0 %v886_v12  ;;  %v915_v25 = vld [vmem:[#allocation2] sm:$0xff]  ;;  %v917_v27 = vld [vmem:[#allocation2 + $0x10] sm:$0xff] }
 0x420   : > { %1486 = vmatprep.subr.mxu0 %v901_v14 }
 0x421   : > { %1487 = vmatpush3.msra.mxu0 %v885_v16 }
 0x422   : > { %1488 = vmatprep.subr.mxu0 %v900_v18 }
 0x423   : > { %1489 = vmatpush3.msra.mxu0 %v884_v19 }
 0x424   : > { %1490 = vmatprep.subr.mxu0 %v899_v20 }
 0x425   : > { %1491 = vmatpush3.msra.mxu0 %v883_v21 }
 0x4dc   : > { %v1531_v22 = vpop.f32.mrf.mxu1 }
 0x4dd   : > { %882 = vst.msk [vmem:[#allocation2 + $0x18] sm:$0xff] %vm519_vm2, %v1531_v22 }
 0x4de   : > { %v870_v23 = vpop.f32.mrf.mxu1 }
 0x4df   : > { %881 = vst.msk [vmem:[#allocation2 + $0x8] sm:$0xff] %vm519_vm2, %v870_v23 }
 0x4e4   : > { %v918_v26 = vld [vmem:[#allocation2 + $0x18] sm:$0xff] }
 0x4e6   : > { %v916_v24 = vld [vmem:[#allocation2 + $0x8] sm:$0xff] }
 0x4e7   : > { %987 = vmatprep.mubr.f32.mxu0 %v916_v24 }
 0x4e8   : > { %988 = vmatmul.mubr.f32.vlgmr.msra.gmra.mxu0 %v915_v25 }
 0x4e9   : > { %992 = vmatprep.mubr.f32.mxu0 %v918_v26 }
 0x4ec   : > { %993 = vmatmul.mubr.f32.gmra.mxu0 %v917_v27 }
 0x5a8   : > { %v1492_v28 = vpop.f32.mrf.mxu0 }
 0x5aa   : > { %v1493_v31 = vpop.f32.mrf.mxu0 }
 0x5ab   : > { %v1494_v34 = vadd.f32 %v1493_v31, %v1492_v28 }
 0x5ac   : > { %v1495_v32 = vpop.f32.mrf.mxu0 }
 0x5ad   : > { %v990_v39 = vadd.f32 %v1494_v34, %v922_v33 }
 0x5ae   : > { %v1496_v37 = vpop.f32.mrf.mxu0 }
 0x5af   : > { %v1497_v38 = vadd.f32 %v1496_v37, %v1495_v32  ;;  %v998_v42 = vmax.f32 %v990_v39, 0.0 }
 0x5b1   : > { %v995_v40 = vadd.f32 %v1497_v38, %v922_v33 }
 0x5b3   : > { %v999_v41 = vmax.f32 %v995_v40, 0.0 }
 0x5b5   : > { %1533 = vmatpush3.msra.mxu1 %v999_v41 }
 0x5b6   : > { %1534 = vmatprep.subr.mxu1 %v1674_v0 }
 0x5b7   : > { %1535 = vmatpush3.msra.mxu1 %v998_v42 }
 0x5b8   : > { %1537 = vmatmul.mubr.msk.f32.vlgmr.msra.gmra.mxu1 %vm316_vm1, %v1000_v43  ;;  %1539 = vmatprep.subr.mxu1 %v1674_v0 }
 0x5b9   : > { %1540 = vmatpush3.msra.mxu1 %v1077_v48  ;;  %1547 = vmatprep.mubr.msk.f32.mxu1 %vm1675_vm3, %v1674_v0 }
 0x5ba   : > { %1541 = vmatprep.subr.mxu1 %v1674_v0 }
 0x5bb   : > { %1542 = vmatpush3.msra.mxu1 %v1076_v44 }
 0x5bc   : > { %1543 = vmatprep.subr.mxu1 %v1674_v0 }
 0x5bd   : > { %1544 = vmatpush3.msra.mxu1 %v1075_v15 }
 0x5be   : > { %1545 = vmatprep.subr.mxu1 %v1674_v0 }
 0x5bf   : > { %1546 = vmatpush3.msra.mxu1 %v1074_v46 }
 0x5c0   : > { %1550 = vmatprep.subr.mxu1 %v1674_v0 }
 0x678   : > { %v1070_v49 = vpop.f32.mrf.mxu1 }
 0x679   : > { %1548 = vmatmul.mubr.msk.f32.vlgmr.msra.gmra.mxu1 %vm519_vm2, %v1070_v49 }
 0x67a   : > { %v1538_v50 = vpop.f32.mrf.mxu1  ;;  %1551 = vmatpush3.msra.mxu1 %v1159_v47  ;;  %1558 = vmatprep.mubr.msk.f32.mxu1 %vm1675_vm3, %v1674_v0 }
 0x67b   : > { %1552 = vmatprep.subr.mxu1 %v1674_v0 }
 0x67c   : > { %1553 = vmatpush3.msra.mxu1 %v1158_v51 }
 0x67d   : > { %1554 = vmatprep.subr.mxu1 %v1674_v0 }
 0x67e   : > { %1555 = vmatpush3.msra.mxu1 %v1157_v52 }
 0x67f   : > { %1556 = vmatprep.subr.mxu1 %v1674_v0 }
 0x680   : > { %1557 = vmatpush3.msra.mxu1 %v1156_v53 }
 0x739   : > { %v1151_v55 = vpop.f32.mrf.mxu1 }
 0x73a   : > { %v1152_v56 = vadd.f32 %v1151_v55, %v1081_v54 }
 0x73b   : > { %v1549_v57 = vpop.f32.mrf.mxu1 }
 0x73c   : > { %v1155_v58 = vmax.f32 %v1152_v56, 0.0 }
 0x73e   : > { %1559 = vmatmul.mubr.msk.f32.vlgmr.msra.gmra.mxu1 %vm519_vm2, %v1155_v58 }
 0x7fe   : > { %v1233_v0 = vpop.f32.mrf.mxu1 }
 0x7ff   : > { %v1234_v60 = vadd.f32 %v1233_v0, %v1163_v59 }
 0x800   : > { %v1560_v61 = vpop.f32.mrf.mxu1 }
 0x801   : > { %v1238_v62 = vsel %vm1237_vm4, %v1234_v60, -inf }
 0x802   : > { %1239 = vmax.xlane.f32.xlu0 %v1238_v62 }
 0x88b   : > { %v1240_v29 = vpop.xlane.xlu0 %1239 }
 0x88c   : > { %v1241_v63 = vsub.f32 %v1234_v60, %v1240_v29 }
 0x88e   : > { %v1242_v1 = vmul.f32 1.442695, %v1241_v63 }
 0x890   : > { %1608 = vpow2.f32 %v1242_v1 }
 0x89d   : > { %v1609_v2 = vpop.eup %1608 }
 0x89e   : > { %v1244_v17 = vsel %vm1237_vm4, %v1609_v2, 0.0 }
 0x89f   : > { %1245 = vadd.xlane.f32.xlu0 %v1244_v17 }
 0x928   : > { %v1246_v13 = vpop.xlane.xlu0 %1245 }
 0x929   : > { %1610 = vrcp.f32 %v1246_v13 }
 0x936   : > { %v1611_v30 = vpop.eup %1610 }
 0x937   : > { %v1248_v3 = vmul.f32 %v1611_v30, %v1609_v2 }
 0x939   : > { %1249 = vst.msk [vmem:[%s245_s26] sm:$0x3] %vm1237_vm4, %v1248_v3 }
 0x93a   : > { %1625 = shalt.err (!%p1622_p3)
}
 0x93b   : > { %s1626_s14 = scalar_lea.hbm %s1262_s9, 32  ;;  %s1630_s17 = scalar_lea.hbm %s2249_s5, 64 }
 0x93c   : > { %p1627_p4 = scmp.ne.s32.totalorder %s1262_s9, %s1626_s14  ;;  %p1631_p9 = scmp.lt.s32.totalorder %s1262_s9, %s2249_s5 }
 0x93d   : > { %p1632_p10 = scmp.lt.s32.totalorder %s1630_s17, %s1626_s14 }
 0x93e   : > { %p1628_p7 = pnand %p1627_p4, %p1745_p5 }
 0x93f   : > { %p1633_p11 = por %p1632_p10, %p1631_p9 }
 0x940   : > { %p1629_p8 = pneg %p1628_p7 }
 0x942   : > { %p1634_p12 = pnand %p1633_p11, %p1629_p8 }
 0x944   : > { %1637 = shalt.err (!%p1634_p12)
}
 0x945   : > { %1561 = dma.vmem_to_hbm [thread:$0]  (%p1745_p5), %s1265_s6, 32, %s1262_s9, %s1251_s10  }
 0x946 PF: > { %p1567_p13 = scmp.ge.s32.totalorder %s1672_s21, 2  ;;  %s1276_s30 = sand.u32 1, %s1660_s18  }
 0x947   : > { %s1277_s26 = scalar_lea.sflag [#allocation4], %s1276_s30 }
 0x948   : > { %p1564_p0 = pnand %p1567_p13, %p1749_p6 }
 0x94a   : > { %p1565_p1 = pneg %p1564_p0 }
 0x94c   : > { %1655 = dma.done.wait (%p1565_p1), %s1277_s26, 32  }
 0x94d   : > { %1657 = vsyncadd (%p1565_p1), %s1277_s26, 4294967264  ;;  %p15_p2 = scmp.ge.s32.totalorder %s1732_s24, 4   ;;  %s2252_s18 = smov %s1664_s19 }
 0x94e   : > { %s2253_s19 = smov %s1668_s20  ;;  %s2254_s20 = smov %s1743_s27 }
 0x94f   : > { %s2255_s21 = smov %s1732_s24  ;;  %17 = sbr.rel (!%p15_p2) target bundleno = 3 (0x3), region = 81 }
 0x954   :  { %1282 = vsyncpa [#allocation4], 1 }
 0x955   :  { %1284 = vsyncpa [#allocation4 + $0x1], 1 }

</bundles_post_ra>
